<compile_context>
chip_gen: v7x
topology: tpu7x:2x2x1
jax: 0.10.0
libtpu: 0.0.40
codegen_flags: <defaults>
</compile_context>

<pallas_src>
import numpy as np
import jax
import jax.numpy as jnp
from jax.experimental import pallas as pl
from jax.experimental.pallas import tpu as pltpu


# ----------------------------------------------------------------------------
# Deterministic [5/5] Pade coefficients of sqrt(1 - z), ascending order,
# rounded to fp16 exactly like the original `pade_p = ... .half()`.
# ----------------------------------------------------------------------------
def _sqrt_taylor_coeffs(n):
    # Taylor coefficients of sqrt(1 - z): c_k = binom(1/2, k) * (-1)^k
    c = np.zeros(n + 1, dtype=np.float64)
    c[0] = 1.0
    b = 1.0
    for k in range(1, n + 1):
        b = b * (0.5 - (k - 1)) / k          # binom(1/2, k)
        c[k] = b * ((-1.0) ** k)
    return c


def _pade_5_5(c):
    m = n = 5
    A = np.zeros((n, n), dtype=np.float64)
    rhs = np.zeros(n, dtype=np.float64)
    for i in range(n):                       # match order z^{m+1+i}
        k = m + 1 + i
        for j in range(1, n + 1):
            A[i, j - 1] = c[k - j]
        rhs[i] = -c[k]
    q_tail = np.linalg.solve(A, rhs)
    q = np.concatenate([[1.0], q_tail])
    p = np.zeros(m + 1, dtype=np.float64)
    for k in range(m + 1):
        p[k] = sum(q[j] * c[k - j] for j in range(0, k + 1))
    return p, q


_taylor = _sqrt_taylor_coeffs(10)
_p_raw, _q_raw = _pade_5_5(_taylor)
# mimic `.half()` rounding of the original module, then use f32 on TPU
PADE_P = [float(np.float16(v)) for v in _p_raw]
PADE_Q = [float(np.float16(v)) for v in _q_raw]


# ----------------------------------------------------------------------------
# Pallas kernel: BT matrices per grid step. Per-matrix Frobenius norm,
# normalization, identity construction, and the chain of 4 live batched
# matmuls accumulating the Pade numerator/denominator polynomials.
# The sqrt(normx) rescale is folded into the numerator before storing.
# ----------------------------------------------------------------------------
def make_pade_kernel(use_bf16_matmul: bool):
    mm_dtype = jnp.bfloat16 if use_bf16_matmul else jnp.float32

    def pade_kernel(x_ref, psqrt_ref, qsqrt_ref):
        x = x_ref[...].astype(jnp.float32)                   # (BT, D, D)
        BT, D, _ = x.shape

        # Per-matrix Frobenius norm (BT, 1, 1). Clamp avoids NaNs for an
        # all-zero matrix (the PyTorch original would NaN there anyway).
        nsq = jnp.sum(x * x, axis=(1, 2), keepdims=True)
        normx = jnp.maximum(jnp.sqrt(nsq), 1e-12)
        a = x / normx                                        # normalized matrices

        row = jax.lax.broadcasted_iota(jnp.int32, (BT, D, D), 1)
        col = jax.lax.broadcasted_iota(jnp.int32, (BT, D, D), 2)
        eye = (row == col).astype(jnp.float32)

        p_app = eye - a
        p_hat = p_app
        p_sqrt = PADE_P[0] * eye
        q_sqrt = PADE_Q[0] * eye
        p_app_mm = p_app.astype(mm_dtype)
        for i in range(5):
            p_sqrt = p_sqrt + PADE_P[i + 1] * p_hat
            q_sqrt = q_sqrt + PADE_Q[i + 1] * p_hat
            if i < 4:
                # final p_hat is never read again -> dead matmul skipped
                p_hat = jnp.einsum(
                    "bij,bjk->bik",
                    p_hat.astype(mm_dtype), p_app_mm,
                    preferred_element_type=jnp.float32,
                )

        # Fold the rescale: solve(Q, P) * sqrt(normx) == solve(Q, P * sqrt(normx))
        psqrt_ref[...] = p_sqrt * jnp.sqrt(normx)
        qsqrt_ref[...] = q_sqrt

    return pade_kernel


def _choose_block_batch(B, D):
    # Live VMEM per block ~ 10-12 arrays of BT*D*D f32 (input/output double
    # buffers + a, p_app, p_hat, p_sqrt, q_sqrt). Keep block under ~8 MiB so it
    # fits comfortably inside even v5e's 16 MiB scoped default.
    cap = max(1, (8 << 20) // (12 * D * D * 4))
    bt = 1
    for cand in range(1, min(B, 8, cap) + 1):
        if B % cand == 0:
            bt = cand
    # Prefer >= 2 grid steps when B > 1 so the (parallel) batch axis can split
    # across both TensorCores on v7x.
    while bt > 1 and (B // bt) < 2:
        nb = bt - 1
        while nb > 1 and B % nb != 0:
            nb -= 1
        bt = nb
    return bt


def pade_parts(x, *, use_bf16_matmul=False):
    B, D, _ = x.shape
    bt = _choose_block_batch(B, D)
    grid = (B // bt,)

    # 4 live batched matmuls per matrix.
    flops = 2 * 4 * B * D * D * D
    bytes_accessed = 3 * B * D * D * 4        # 1 input + 2 outputs, f32
    vmem_est = 12 * bt * D * D * 4
    vmem_limit = int(min(64 << 20, max(16 << 20, 2 * vmem_est)))

    out_shape = (
        jax.ShapeDtypeStruct((B, D, D), jnp.float32),   # p_sqrt * sqrt(normx)
        jax.ShapeDtypeStruct((B, D, D), jnp.float32),   # q_sqrt
    )
    return pl.pallas_call(
        make_pade_kernel(use_bf16_matmul),
        out_shape=out_shape,
        grid_spec=pltpu.PrefetchScalarGridSpec(
            num_scalar_prefetch=0,
            grid=grid,
            in_specs=[pl.BlockSpec((bt, D, D), lambda b: (b, 0, 0))],
            out_specs=(
                pl.BlockSpec((bt, D, D), lambda b: (b, 0, 0)),
                pl.BlockSpec((bt, D, D), lambda b: (b, 0, 0)),
            ),
        ),
        compiler_params=pltpu.CompilerParams(
            dimension_semantics=("parallel",),
            vmem_limit_bytes=vmem_limit,
        ),
        cost_estimate=pl.CostEstimate(
            flops=flops, transcendentals=2 * B, bytes_accessed=bytes_accessed),
    )(x)


# ----------------------------------------------------------------------------
# Full PadeSqt forward
# ----------------------------------------------------------------------------
def pade_sqt_forward(x, *, use_bf16_matmul=False):
    x = x.astype(jnp.float32)
    B, D, _ = x.shape

    p_scaled, q_sqrt = pade_parts(x, use_bf16_matmul=use_bf16_matmul)

    # TODO(synk): torch.linalg.solve (batched LU) has no clean Pallas equivalent;
    # done in plain JAX/XLA. Original also casts the solve result to fp16 before
    # rescaling; kept f32 here.
    y = jnp.linalg.solve(q_sqrt, p_scaled)                 # rescale already folded

    # Triuvec: upper triangle (incl. diagonal), row-major — static gather (glue).
    triu_idx = np.nonzero(np.triu(np.ones((D, D), dtype=bool)).reshape(-1))[0]
    return y.reshape(B, D * D)[:, triu_idx]                # (B, D*(D+1)//2)


# ----------------------------------------------------------------------------
# Pure-JAX reference (same math, no Pallas) for a sanity check
# ----------------------------------------------------------------------------
def reference_forward(x):
    x = x.astype(jnp.float32)
    B, D, _ = x.shape
    normx = jnp.sqrt(jnp.sum(x * x, axis=(1, 2), keepdims=True))
    eye = jnp.broadcast_to(jnp.eye(D, dtype=jnp.float32), (B, D, D))
    a = x / normx
    p_app = eye - a
    p_hat = p_app
    p_sqrt = PADE_P[0] * eye
    q_sqrt = PADE_Q[0] * eye
    for i in range(5):
        p_sqrt = p_sqrt + PADE_P[i + 1] * p_hat
        q_sqrt = q_sqrt + PADE_Q[i + 1] * p_hat
        if i < 4:
            p_hat = jnp.einsum("bij,bjk->bik", p_hat, p_app)
    y = jnp.linalg.solve(q_sqrt, p_sqrt) * jnp.sqrt(normx)
    triu_idx = np.nonzero(np.triu(np.ones((D, D), dtype=bool)).reshape(-1))[0]
    return y.reshape(B, D * D)[:, triu_idx]


if __name__ == "__main__":
    B, D = 2, 16
    key = jax.random.PRNGKey(0)
    m = jax.random.normal(key, (B, D, D), dtype=jnp.float32)
    # SPD-ish input (covariance-like matrix, as PadeSqt expects)
    x = jnp.einsum("bij,bkj->bik", m, m) / D + 0.1 * jnp.eye(D)[None]

    out = pade_sqt_forward(x)
    out = jax.block_until_ready(out)

    assert out.shape == (B, D * (D + 1) // 2), out.shape

    ref = jax.block_until_ready(reference_forward(x))
    np.testing.assert_allclose(np.asarray(out), np.asarray(ref), rtol=5e-4, atol=5e-4)

    print("KERNEL_OK")
</pallas_src>

<mosaic_0001>
module attributes {stable_mosaic.version = 11 : i64} {
  func.func @pade_kernel(%arg0: i32, %arg1: memref<1x16x16xf32, #tpu.memory_space<vmem>>, %arg2: memref<1x16x16xf32, #tpu.memory_space<vmem>>, %arg3: memref<1x16x16xf32, #tpu.memory_space<vmem>>) attributes {dimension_semantics = [#tpu.dimension_semantics<parallel>], iteration_bounds = array<i64: 2>, scalar_prefetch = 0 : i64, scratch_operands = 0 : i64, tpu.core_type = #tpu.core_type<tc>, window_params = [{transform_indices = @transform_0, window_bounds = array<i64: 1, 16, 16>}, {transform_indices = @transform_1, window_bounds = array<i64: 1, 16, 16>}, {transform_indices = @transform_2, window_bounds = array<i64: 1, 16, 16>}]} {
    %c0 = arith.constant 0 : index
    %c0_0 = arith.constant 0 : index
    %c0_1 = arith.constant 0 : index
    %0 = vector.load %arg1[%c0, %c0_0, %c0_1] : memref<1x16x16xf32, #tpu.memory_space<vmem>>, vector<1x16x16xf32>
    %1 = arith.mulf %0, %0 : vector<1x16x16xf32>
    %cst = arith.constant dense<0.000000e+00> : vector<1xf32>
    %2 = vector.multi_reduction <add>, %1, %cst [1, 2] : vector<1x16x16xf32> to vector<1xf32>
    %3 = vector.shape_cast %2 : vector<1xf32> to vector<1x1x1xf32>
    %4 = math.sqrt %3 : vector<1x1x1xf32>
    %cst_2 = arith.constant 9.99999996E-13 : f32
    %5 = vector.broadcast %cst_2 : f32 to vector<1x1x1xf32>
    %6 = arith.maximumf %4, %5 : vector<1x1x1xf32>
    %7 = vector.broadcast %6 : vector<1x1x1xf32> to vector<1x16x16xf32>
    %8 = arith.divf %0, %7 : vector<1x16x16xf32>
    %9 = tpu.iota {dimensions = array<i32: 1>} : vector<1x16x16xi32>
    %10 = tpu.iota {dimensions = array<i32: 2>} : vector<1x16x16xi32>
    %11 = arith.cmpi eq, %9, %10 : vector<1x16x16xi32>
    %12 = arith.extui %11 : vector<1x16x16xi1> to vector<1x16x16xi32>
    %13 = arith.sitofp %12 : vector<1x16x16xi32> to vector<1x16x16xf32>
    %14 = arith.subf %13, %8 : vector<1x16x16xf32>
    %cst_3 = arith.constant 1.000000e+00 : f32
    %15 = vector.broadcast %cst_3 : f32 to vector<1x16x16xf32>
    %16 = arith.mulf %15, %13 : vector<1x16x16xf32>
    %cst_4 = arith.constant 1.000000e+00 : f32
    %17 = vector.broadcast %cst_4 : f32 to vector<1x16x16xf32>
    %18 = arith.mulf %17, %13 : vector<1x16x16xf32>
    %cst_5 = arith.constant -2.750000e+00 : f32
    %19 = vector.broadcast %cst_5 : f32 to vector<1x16x16xf32>
    %20 = arith.mulf %19, %14 : vector<1x16x16xf32>
    %21 = arith.addf %16, %20 : vector<1x16x16xf32>
    %cst_6 = arith.constant -2.250000e+00 : f32
    %22 = vector.broadcast %cst_6 : f32 to vector<1x16x16xf32>
    %23 = arith.mulf %22, %14 : vector<1x16x16xf32>
    %24 = arith.addf %18, %23 : vector<1x16x16xf32>
    "tpu.trace_start"() <{level = 10 : i32, message = "bij,bjk->bik"}> : () -> ()
    %cst_7 = arith.constant dense<0.000000e+00> : vector<1x16x16xf32>
    %25 = tpu.matmul %14, %14, %cst_7 {dimension_numbers = #tpu.dot_dimension_numbers<[2], [1], [1], [2], [0, 0, 0, 1, 1, 2], [0], [0]>} : vector<1x16x16xf32>, vector<1x16x16xf32>, vector<1x16x16xf32> -> vector<1x16x16xf32>
    "tpu.trace_stop"() : () -> ()
    %cst_8 = arith.constant 2.750000e+00 : f32
    %26 = vector.broadcast %cst_8 : f32 to vector<1x16x16xf32>
    %27 = arith.mulf %26, %25 : vector<1x16x16xf32>
    %28 = arith.addf %21, %27 : vector<1x16x16xf32>
    %cst_9 = arith.constant 1.750000e+00 : f32
    %29 = vector.broadcast %cst_9 : f32 to vector<1x16x16xf32>
    %30 = arith.mulf %29, %25 : vector<1x16x16xf32>
    %31 = arith.addf %24, %30 : vector<1x16x16xf32>
    "tpu.trace_start"() <{level = 10 : i32, message = "bij,bjk->bik"}> : () -> ()
    %cst_10 = arith.constant dense<0.000000e+00> : vector<1x16x16xf32>
    %32 = tpu.matmul %25, %14, %cst_10 {dimension_numbers = #tpu.dot_dimension_numbers<[2], [1], [1], [2], [0, 0, 0, 1, 1, 2], [0], [0]>} : vector<1x16x16xf32>, vector<1x16x16xf32>, vector<1x16x16xf32> -> vector<1x16x16xf32>
    "tpu.trace_stop"() : () -> ()
    %cst_11 = arith.constant -1.203125 : f32
    %33 = vector.broadcast %cst_11 : f32 to vector<1x16x16xf32>
    %34 = arith.mulf %33, %32 : vector<1x16x16xf32>
    %35 = arith.addf %28, %34 : vector<1x16x16xf32>
    %cst_12 = arith.constant -5.468750e-01 : f32
    %36 = vector.broadcast %cst_12 : f32 to vector<1x16x16xf32>
    %37 = arith.mulf %36, %32 : vector<1x16x16xf32>
    %38 = arith.addf %31, %37 : vector<1x16x16xf32>
    "tpu.trace_start"() <{level = 10 : i32, message = "bij,bjk->bik"}> : () -> ()
    %cst_13 = arith.constant dense<0.000000e+00> : vector<1x16x16xf32>
    %39 = tpu.matmul %32, %14, %cst_13 {dimension_numbers = #tpu.dot_dimension_numbers<[2], [1], [1], [2], [0, 0, 0, 1, 1, 2], [0], [0]>} : vector<1x16x16xf32>, vector<1x16x16xf32>, vector<1x16x16xf32> -> vector<1x16x16xf32>
    "tpu.trace_stop"() : () -> ()
    %cst_14 = arith.constant 0.21484375 : f32
    %40 = vector.broadcast %cst_14 : f32 to vector<1x16x16xf32>
    %41 = arith.mulf %40, %39 : vector<1x16x16xf32>
    %42 = arith.addf %35, %41 : vector<1x16x16xf32>
    %cst_15 = arith.constant 0.05859375 : f32
    %43 = vector.broadcast %cst_15 : f32 to vector<1x16x16xf32>
    %44 = arith.mulf %43, %39 : vector<1x16x16xf32>
    %45 = arith.addf %38, %44 : vector<1x16x16xf32>
    "tpu.trace_start"() <{level = 10 : i32, message = "bij,bjk->bik"}> : () -> ()
    %cst_16 = arith.constant dense<0.000000e+00> : vector<1x16x16xf32>
    %46 = tpu.matmul %39, %14, %cst_16 {dimension_numbers = #tpu.dot_dimension_numbers<[2], [1], [1], [2], [0, 0, 0, 1, 1, 2], [0], [0]>} : vector<1x16x16xf32>, vector<1x16x16xf32>, vector<1x16x16xf32> -> vector<1x16x16xf32>
    "tpu.trace_stop"() : () -> ()
    %cst_17 = arith.constant -0.0107421875 : f32
    %47 = vector.broadcast %cst_17 : f32 to vector<1x16x16xf32>
    %48 = arith.mulf %47, %46 : vector<1x16x16xf32>
    %49 = arith.addf %42, %48 : vector<1x16x16xf32>
    %cst_18 = arith.constant -9.765625E-4 : f32
    %50 = vector.broadcast %cst_18 : f32 to vector<1x16x16xf32>
    %51 = arith.mulf %50, %46 : vector<1x16x16xf32>
    %52 = arith.addf %45, %51 : vector<1x16x16xf32>
    %53 = math.sqrt %6 : vector<1x1x1xf32>
    %54 = vector.broadcast %53 : vector<1x1x1xf32> to vector<1x16x16xf32>
    %55 = arith.mulf %49, %54 : vector<1x16x16xf32>
    %c0_19 = arith.constant 0 : index
    %c0_20 = arith.constant 0 : index
    %c0_21 = arith.constant 0 : index
    %56 = vector.load %arg2[%c0_19, %c0_20, %c0_21] : memref<1x16x16xf32, #tpu.memory_space<vmem>>, vector<1x16x16xf32>
    tpu.vector_store %arg2[%c0_19, %c0_20, %c0_21], %55 {strides = array<i32>} : memref<1x16x16xf32, #tpu.memory_space<vmem>>, vector<1x16x16xf32>,
    %c0_22 = arith.constant 0 : index
    %c0_23 = arith.constant 0 : index
    %c0_24 = arith.constant 0 : index
    %57 = vector.load %arg3[%c0_22, %c0_23, %c0_24] : memref<1x16x16xf32, #tpu.memory_space<vmem>>, vector<1x16x16xf32>
    tpu.vector_store %arg3[%c0_22, %c0_23, %c0_24], %52 {strides = array<i32>} : memref<1x16x16xf32, #tpu.memory_space<vmem>>, vector<1x16x16xf32>,
    return
  }
  func.func @transform_0(%arg0: i32) -> (i32, i32, i32) {
    %c0_i32 = arith.constant 0 : i32
    %c0_i32_0 = arith.constant 0 : i32
    %c0_i32_1 = arith.constant 0 : i32
    return %arg0, %c0_i32, %c0_i32_0 : i32, i32, i32
  }
  func.func @transform_1(%arg0: i32) -> (i32, i32, i32) {
    %c0_i32 = arith.constant 0 : i32
    %c0_i32_0 = arith.constant 0 : i32
    %c0_i32_1 = arith.constant 0 : i32
    return %arg0, %c0_i32, %c0_i32_0 : i32, i32, i32
  }
  func.func @transform_2(%arg0: i32) -> (i32, i32, i32) {
    %c0_i32 = arith.constant 0 : i32
    %c0_i32_0 = arith.constant 0 : i32
    %c0_i32_1 = arith.constant 0 : i32
    return %arg0, %c0_i32, %c0_i32_0 : i32, i32, i32
  }
}

</mosaic_0001>

<bundles_post_ra>
// kernel: tpu_custom_call.1
= control target key start
LH: loop header
LB: loop body
LE: loop exit
PB: predicated region body
PF: predicated region fallthrough
CT: control target
= control target key end

     0   :  { %8 = vsyncpa [#allocation3], 0  ;;  %s1268_s0 = inlined_call_operand.hbm [shape: f32[2,16,16], index: 0, kind: input, shape index: {}]   ;;  %s1269_s1 = inlined_call_operand.hbm [shape: f32[2,16,16], index: 1, kind: output, shape index: {0}]   ;;  %s1270_s2 = inlined_call_operand.hbm [shape: f32[2,16,16], index: 2, kind: output, shape index: {1}]  }
   0x1   :  { %10 = vsyncpa [#allocation3 + $0x1], 0 }
   0x2   :  { %11 = vsyncpa [#allocation4], 0 }
   0x3   :  { %13 = vsyncpa [#allocation4 + $0x1], 0 }
   0x4   :  { %14 = vsyncpa [#allocation7], 0 }
   0x5   :  { %16 = vsyncpa [#allocation7 + $0x1], 0  ;;  %s1036_s9 = smov 0   ;;  %s1038_s10 = smov 0  }
   0x6   :  { %s1040_s11 = smov 0   ;;  %s1042_s12 = smov 0  }
   0x7 LB: > { %s1057_s13 = sadd.s32 4294967295, %s1011_s12   ;;  %s730_s14 = sadd.s32 4294967294, %s1011_s12   ;;  %s1011_s12 = sphi %s1042_s12, %s1283_s12   ;;  %s1007_s11 = sphi %s1040_s11, %s1282_s11   ;;  %s1003_s10 = sphi %s1038_s10, %s1281_s10   ;;  %s999_s9 = sphi %s1036_s9, %s1280_s9  }
   0x8   : > { %s1061_s15 = sadd.s32 1, %s1011_s12   ;;  %s29_s16 = sadd.s32 1, %s1007_s11 }
   0x9   : > { %s26_s17 = ssub.s32 %s1011_s12, %s1061_s15  ;;  %p36_p0 = scmp.ne.s32.totalorder %s1007_s11, %s1003_s10 }
   0xa   : > { %p27_p1 = scmp.eq.s32.totalorder %s26_s17, 0  ;;  %p37_p2 = scmp.eq.s32.totalorder %s1011_s12, 0 }
   0xb   : > { %p42_p3 = scmp.ne.s32.totalorder %s1003_s10, %s999_s9  ;;  %p43_p4 = scmp.eq.s32.totalorder %s1057_s13, 0 }
   0xc   : > { %s1073_s18 = scalar_select %p27_p1, %s1007_s11, %s29_s16  }
   0xd   : > { %p1075_p5 = por %p37_p2, %p36_p0  ;;  %p1079_p6 = por %p43_p4, %p42_p3 }
   0xe   : > { %p66_p7 = scmp.eq.s32.totalorder %s1057_s13, 1  ;;  %p72_p8 = scmp.eq.s32.totalorder %s730_s14, 1 }
   0xf   : > { %p838_p10 = scmp.lt.s32.totalorder %s1011_s12, 2  ;;  %s118_s23 = sand.u32 1, %s1007_s11  }
  0x10   : > { %p1086_p11 = por %p66_p7, %p36_p0  ;;  %p1090_p12 = por %p72_p8, %p42_p3 }
  0x11   : > { %s758_s24 = sshll.u32 %s1011_s12, 8  ;;  %s733_s25 = sshll.u32 %s118_s23, 4 }
  0x12   : > { %s1274_s21 = scalar_select %p1086_p11, 1, 0 }
  0x13   : > { %s1275_s22 = scalar_select %p1090_p12, 1, 0 }
  0x14   : > { %s1099_s28 = scalar_lea.hbm %s1268_s0, %s758_s24  ;;  %s122_s29 = scalar_lea.vmem [#allocation2], %s733_s25 }
  0x15   : > { %s129_s30 = sshll.u32 %s122_s29, 4  ;;  %p1103_p13 = pnand %p838_p10, %p1075_p5  ;;  %s1107_s30 = int_to_ptr.vmem [resolvable:$true] %s129_s30 }
  0x16   : > { %s1109_s4 = scalar_lea.sflag [#allocation3], %s118_s23  ;;  %s883_s5 = scalar_lea.hbm %s1099_s28, 256 }
  0x17   : > { %p884_p0 = scmp.ne.s32.totalorder %s1099_s28, %s883_s5  ;;  %p885_p1 = pneg %p1103_p13 }
  0x18   : > { %s888_s8 = scalar_lea.hbm %s1268_s0, 512  ;;  %p889_p4 = scmp.lt.u32.totalorder %s1099_s28, %s1268_s0 }
  0x19   : > { %p886_p2 = pnand %p885_p1, %p884_p0  ;;  %p890_p5 = scmp.lt.u32.totalorder %s888_s8, %s883_s5 }
  0x1a   : > { %p892_p8 = scmp.lt.u32.totalorder %s883_s5, %s1099_s28 }
  0x1b   : > { %p887_p3 = pneg %p886_p2  ;;  %p891_p7 = por %p890_p5, %p889_p4 }
  0x1d   : > { %p893_p10 = por %p892_p8, %p891_p7 }
  0x1f   : > { %p894_p9 = pnand %p893_p10, %p887_p3 }
  0x21   : > { %897 = shalt.err (!%p894_p9)
}
  0x22   : > { %s898_s17 = scalar_lea.vmem %s1107_s30, 256  ;;  %s1013_s19 = smov [#allocation2]  }
  0x23   : > { %p899_p0 = scmp.ne.s32.totalorder %s1107_s30, %s898_s17  ;;  %s903_s23 = sshll.u32 %s1013_s19, 4  ;;  %s904_s23 = int_to_ptr.vmem [resolvable:$false] %s903_s23 }
  0x24   : > { %s905_s24 = scalar_lea.vmem %s904_s23, 512  ;;  %p906_p11 = scmp.lt.s32.totalorder %s1107_s30, %s904_s23 }
  0x25   : > { %p901_p2 = pnand %p899_p0, %p885_p1  ;;  %p907_p4 = scmp.lt.s32.totalorder %s905_s24, %s898_s17 }
  0x27   : > { %p902_p12 = pneg %p901_p2  ;;  %p908_p5 = por %p907_p4, %p906_p11 }
  0x29   : > { %p909_p7 = pnand %p908_p5, %p902_p12 }
  0x2b   : > { %912 = shalt.err (!%p909_p7)
}
  0x2c   : > { %s1014_s25 = smov 128   ;;  %s1015_s26 = smov 8  }
  0x2d   : > { %830 = dma.hbm_to_vmem [thread:$0]  (!%p1103_p13), %s1099_s28, 256, %s1107_s30, %s1109_s4, %s1014_s25, %s1014_s25, %s1015_s26  }
  0x2e   : > { %p736_p9 = scmp.ge.s32.totalorder %s1011_s12, 1  ;;  %p137_p1 = scmp.lt.s32.totalorder %s1011_s12, 3 }
  0x30   : > { %p138_p3 = pnand %p736_p9, %p137_p1 }
  0x31   : > { %s1140_s27 = sand.u32 (!%p138_p3), 1, %s1003_s10  }
  0x32   : > { %141 = sbr.rel (%p138_p3) target bundleno = 1154 (0x482), region = 24  ;;  %s1143_s29 = sshll.u32 (!%p138_p3), %s1140_s27, 4 }
  0x33   : > { %s144_s5 = scalar_lea.sflag (!%p138_p3), [#allocation3], %s1140_s27  ;;  %s147_s6 = scalar_lea.vmem (!%p138_p3), [#allocation2], %s1143_s29 }
  0x39   : > { %986 = dma.done.wait (%p1079_p6), %s144_s5, 256  }
  0x3a   : > { %988 = vsyncadd (%p1079_p6), %s144_s5, 4294967040  ;;  %v173_v0 = vld [vmem:[%s147_s6] sm:$0xff]  ;;  %v174_v1 = vld [vmem:[%s147_s6 + $0x8] sm:$0xff]  ;;  %vm177_vm0 = vcmask 130048   ;;  %v200_v17 = vlaneseq  ;;  %v1016_v25 = vmov 0.0   ;;  %s759_s20 = sshll.u32 %s1057_s13, 8 }
  0x3b   : > { %v175_v2 = vmul.f32 %v173_v0, %v173_v0  ;;  %v176_v3 = vmul.f32 %v174_v1, %v174_v1  ;;  %s172_s28 = scalar_lea.vmem [#allocation6], %s1143_s29  ;;  %s1172_s3 = scalar_lea.vmem [#allocation5], %s1143_s29 }
  0x3c   : > { %v201_v21 = vshrl.u32 %v200_v17, 7  ;;  %v204_v23 = vand.u32 127, %v200_v17  ;;  %s625_s30 = sshll.u32 %s172_s28, 4  ;;  %s609_s4 = sshll.u32 %s1172_s3, 4  ;;  %s1181_s30 = int_to_ptr.vmem [resolvable:$true] %s625_s30  ;;  %s1190_s4 = int_to_ptr.vmem [resolvable:$true] %s609_s4 }
  0x3d   : > { %v178_v4 = vsel %vm177_vm0, %v175_v2, 0.0  ;;  %v179_v5 = vsel %vm177_vm0, %v176_v3, 0.0  ;;  %s1179_s8 = scalar_lea.hbm %s1270_s2, %s759_s20  ;;  %s1188_s17 = scalar_lea.hbm %s1269_s1, %s759_s20 }
  0x3e   : > { %v180_v6 = vadd.f32 %v179_v5, %v178_v4  ;;  %v202_v22 = vadd.s32 8, %v201_v21  ;;  %vm205_vm3 = vcmp.eq.s32.totalorder %v201_v21, %v204_v23  ;;  %s596_s19 = scalar_lea.sflag [#allocation7], %s1140_s27  ;;  %s913_s23 = scalar_lea.vmem %s1181_s30, 256 }
  0x3f   : > { %v740_v26 = vsel %vm205_vm3, 1.0, %v1016_v25  ;;  %p914_p6 = scmp.ne.s32.totalorder %s1181_s30, %s913_s23  ;;  %p1277_p11 = scmp.ne.s32.totalorder %s1274_s21, 0 }
  0x40   : > { %181 = vadd.xlane.f32.xlu0 %v180_v6  ;;  %vm206_vm4 = vcmp.eq.s32.totalorder %v202_v22, %v204_v23  ;;  %s1017_s24 = smov [#allocation6]  }
  0x41   : > { %v741_v27 = vsel %vm206_vm4, 1.0, %v1016_v25  ;;  %p915_p12 = pnand %p914_p6, %p1277_p11  ;;  %s917_s25 = sshll.u32 %s1017_s24, 4  ;;  %s918_s25 = int_to_ptr.vmem [resolvable:$false] %s917_s25 }
  0x42   : > { %s919_s26 = scalar_lea.vmem %s918_s25, 512  ;;  %p920_p8 = scmp.lt.s32.totalorder %s1181_s30, %s918_s25 }
  0x43   : > { %p916_p13 = pneg %p915_p12  ;;  %p921_p10 = scmp.lt.s32.totalorder %s919_s26, %s913_s23 }
  0x45   : > { %p922_p0 = por %p921_p10, %p920_p8 }
  0x47   : > { %p923_p2 = pnand %p922_p0, %p916_p13 }
  0xcd   : > { %v182_v7 = vpop.xlane.xlu0 %181 }
  0xce   : > { %v183_v8 = vrot.slane %v182_v7, 4 }
  0xd0   : > { %v184_v9 = vadd.f32 %v183_v8, %v182_v7 }
  0xd2   : > { %v185_v10 = vrot.slane %v184_v9, 2 }
  0xd4   : > { %v186_v11 = vadd.f32 %v185_v10, %v184_v9 }
  0xd6   : > { %v187_v12 = vrot.slane %v186_v11, 1 }
  0xd8   : > { %v188_v13 = vadd.f32 %v187_v12, %v186_v11 }
  0xda   : > { %877 = vrsqrt.f32 %v188_v13  ;;  %vm191_vm1 = vcmp.eq.f32.partialorder %v188_v13, inf  ;;  %v194_v16 = vand.u32 2147483648, %v188_v13  ;;  %vm193_vm2 = vcmp.eq.f32.partialorder %v188_v13, 0.0 }
  0xe4   : > { %v878_v14 = vpop.eup %877 }
  0xe5   : > { %v190_v15 = vmul.f32 %v878_v14, %v188_v13 }
  0xe7   : > { %v192_v18 = vsel %vm191_vm1, %v188_v13, %v190_v15 }
  0xe8   : > { %v195_v19 = vsel %vm193_vm2, %v194_v16, %v192_v18 }
  0xe9   : > { %v1153_v20 = vmax.f32 %v195_v19, 1e-12 }
  0xeb   : > { %879 = vrcp.f32 %v1153_v20  ;;  %vm579_vm5 = vcmp.eq.f32.partialorder %v1153_v20, inf  ;;  %v582_v16 = vand.u32 2147483648, %v1153_v20  ;;  %vm581_vm6 = vcmp.eq.f32.partialorder %v1153_v20, 0.0 }
  0xec   : > { %881 = vrsqrt.f32 %v1153_v20 }
  0xf5   : > { %v880_v24 = vpop.eup %879 }
  0xf6   : > { %v198_v28 = vmul.f32 %v880_v24, %v173_v0  ;;  %v199_v29 = vmul.f32 %v880_v24, %v174_v1  ;;  %v882_v7 = vpop.eup %881 }
  0xf7   : > { %v578_v8 = vmul.f32 %v882_v7, %v1153_v20 }
  0xf8   : > { %v211_v30 = vsub.f32 %v740_v26, %v198_v28  ;;  %v212_v31 = vsub.f32 %v741_v27, %v199_v29 }
  0xf9   : > { %v580_v13 = vsel %vm579_vm5, %v1153_v20, %v578_v8 }
  0xfa   : > { %v805_v32 = vpack.c.bf16 %v212_v31, %v211_v30  ;;  %781 = vmatprep.mubr.msk.f32.mxu0 %vm177_vm0, %v211_v30  ;;  %v214_v33 = vmul.f32 -2.75, %v212_v31  ;;  %v218_v34 = vmul.f32 -2.25, %v212_v31  ;;  %v213_v35 = vmul.f32 -2.75, %v211_v30 }
  0xfb   : > { %v217_v36 = vmul.f32 -2.25, %v211_v30  ;;  %v583_v22 = vsel %vm581_vm6, %v582_v16, %v580_v13 }
  0xfc   : > { %806 = vmatprep.subr.bf16.mxu0 %v805_v32  ;;  %810 = vmatprep.subr.bf16.mxu1 %v805_v32  ;;  %v216_v37 = vadd.f32 %v741_v27, %v214_v33  ;;  %v220_v38 = vadd.f32 %v741_v27, %v218_v34  ;;  %v215_v39 = vadd.f32 %v740_v26, %v213_v35 }
  0xfd   : > { %808 = vmatpush3.bf16.msra.mxu0 %v805_v32  ;;  %812 = vmatpush3.bf16.msra.mxu1 %v805_v32  ;;  %v219_v40 = vadd.f32 %v740_v26, %v217_v36 }
  0xfe   : > { %814 = vmatprep.subr.bf16.mxu0 %v805_v32  ;;  %818 = vmatprep.subr.bf16.mxu1 %v805_v32 }
 0x100   : > { %782 = vmatmul.mubr.msk.f32.vlgmr.msra.gmra.mrb[0].mxu0 %vm177_vm0, %v212_v31 }
 0x101   : > { %816 = vmatpush3.bf16.msra.mxu0 %v805_v32 }
 0x1d3   : > { %v783_v41 = vpop.f32.mrb[0].mxu0 }
 0x1d4   : > { %v303_v42 = vmul.f32 2.75, %v783_v41  ;;  %v307_v43 = vmul.f32 1.75, %v783_v41  ;;  %v293_v44 = vpop.f32.mrb[1].mxu0 }
 0x1d5   : > { %v302_v45 = vmul.f32 2.75, %v293_v44  ;;  %v306_v46 = vmul.f32 1.75, %v293_v44  ;;  %788 = vmatprep.mubr.msk.f32.mxu1 %vm177_vm0, %v293_v44 }
 0x1d6   : > { %v305_v47 = vadd.f32 %v303_v42, %v216_v37  ;;  %v309_v48 = vadd.f32 %v307_v43, %v220_v38  ;;  %789 = vmatmul.mubr.msk.f32.vlgmr.msra.gmra.mrb[0].mxu1 %vm177_vm0, %v783_v41 }
 0x1d7   : > { %v304_v49 = vadd.f32 %v302_v45, %v215_v39  ;;  %v308_v50 = vadd.f32 %v306_v46, %v219_v40  ;;  %820 = vmatpush3.bf16.msra.mxu1 %v805_v32 }
 0x2a9   : > { %v790_v51 = vpop.f32.mrb[0].mxu1 }
 0x2aa   : > { %v392_v52 = vmul.f32 -1.203125, %v790_v51  ;;  %v396_v53 = vmul.f32 -0.546875, %v790_v51  ;;  %v382_v54 = vpop.f32.mrb[1].mxu1 }
 0x2ab   : > { %v391_v55 = vmul.f32 -1.203125, %v382_v54  ;;  %v395_v56 = vmul.f32 -0.546875, %v382_v54  ;;  %795 = vmatprep.mubr.msk.f32.mxu0 %vm177_vm0, %v382_v54 }
 0x2ac   : > { %v394_v57 = vadd.f32 %v392_v52, %v305_v47  ;;  %v398_v58 = vadd.f32 %v396_v53, %v309_v48  ;;  %796 = vmatmul.mubr.msk.f32.vlgmr.msra.gmra.mrb[2].mxu0 %vm177_vm0, %v790_v51 }
 0x2ad   : > { %v393_v59 = vadd.f32 %v391_v55, %v304_v49  ;;  %v397_v60 = vadd.f32 %v395_v56, %v308_v50 }
 0x37f   : > { %v797_v61 = vpop.f32.mrb[2].mxu0 }
 0x380   : > { %v481_v62 = vmul.f32 0.21484375, %v797_v61  ;;  %v485_v63 = vmul.f32 0.05859375, %v797_v61  ;;  %v471_v0 = vpop.f32.mrb[3].mxu0 }
 0x381   : > { %v480_v1 = vmul.f32 0.21484375, %v471_v0  ;;  %v484_v2 = vmul.f32 0.05859375, %v471_v0  ;;  %802 = vmatprep.mubr.msk.f32.mxu1 %vm177_vm0, %v471_v0 }
 0x382   : > { %v483_v3 = vadd.f32 %v481_v62, %v394_v57  ;;  %v487_v4 = vadd.f32 %v485_v63, %v398_v58  ;;  %803 = vmatmul.mubr.msk.f32.vlgmr.msra.gmra.mrb[2].mxu1 %vm177_vm0, %v797_v61 }
 0x383   : > { %v482_v5 = vadd.f32 %v480_v1, %v393_v59  ;;  %v486_v6 = vadd.f32 %v484_v2, %v397_v60 }
 0x455   : > { %v804_v9 = vpop.f32.mrb[2].mxu1 }
 0x456   : > { %v570_v10 = vmul.f32 -0.0107421875, %v804_v9  ;;  %v574_v11 = vmul.f32 -0.0009765625, %v804_v9  ;;  %v560_v12 = vpop.f32.mrb[3].mxu1 }
 0x457   : > { %v569_v14 = vmul.f32 -0.0107421875, %v560_v12  ;;  %v573_v15 = vmul.f32 -0.0009765625, %v560_v12 }
 0x458   : > { %v572_v17 = vadd.f32 %v570_v10, %v483_v3  ;;  %v576_v18 = vadd.f32 %v574_v11, %v487_v4 }
 0x459   : > { %v571_v19 = vadd.f32 %v569_v14, %v482_v5  ;;  %v575_v21 = vadd.f32 %v573_v15, %v486_v6 }
 0x45a   : > { %589 = vst.msk [vmem:[%s172_s28 + $0x8] sm:$0xff] %vm177_vm0, %v576_v18  ;;  %v585_v23 = vmul.f32 %v583_v22, %v572_v17 }
 0x45b   : > { %v584_v24 = vmul.f32 %v583_v22, %v571_v19  ;;  %588 = vst.msk [vmem:[%s172_s28] sm:$0xff] %vm177_vm0, %v575_v21 }
 0x45c   : > { %587 = vst.msk [vmem:[%s1172_s3 + $0x8] sm:$0xff] %vm177_vm0, %v585_v23 }
 0x45d   : > { %926 = shalt.err (!%p923_p2)
}
 0x45e   : > { %s927_s29 = scalar_lea.hbm %s1179_s8, 256  ;;  %s931_s20 = scalar_lea.hbm %s1270_s2, 512 }
 0x45f   : > { %p928_p4 = scmp.ne.s32.totalorder %s1179_s8, %s927_s29  ;;  %p932_p9 = scmp.lt.u32.totalorder %s1179_s8, %s1270_s2 }
 0x460   : > { %p933_p1 = scmp.lt.u32.totalorder %s931_s20, %s927_s29  ;;  %p935_p6 = scmp.lt.u32.totalorder %s927_s29, %s1179_s8 }
 0x461   : > { %p929_p5 = pnand %p928_p4, %p1277_p11 }
 0x462   : > { %p934_p3 = por %p933_p1, %p932_p9 }
 0x463   : > { %p930_p7 = pneg %p929_p5 }
 0x464   : > { %p936_p12 = por %p935_p6, %p934_p3 }
 0x466   : > { %p937_p13 = pnand %p936_p12, %p930_p7 }
 0x468   : > { %940 = shalt.err (!%p937_p13)
}
 0x469   : > { %s1018_s7 = smov 128   ;;  %s1019_s14 = smov 8   ;;  %586 = vst.msk [vmem:[%s1172_s3] sm:$0xff] %vm177_vm0, %v584_v24 }
 0x46a   : > { %824 = dma.vmem_to_hbm [thread:$0]  (%p1277_p11), %s1181_s30, 256, %s1179_s8, %s596_s19, %s1018_s7, %s1018_s7, %s1019_s14  }
 0x46b   : > { %s591_s16 = scalar_lea.sflag [#allocation4], %s1140_s27  ;;  %s941_s23 = scalar_lea.vmem %s1190_s4, 256 }
 0x46c   : > { %p942_p8 = scmp.ne.s32.totalorder %s1190_s4, %s941_s23  ;;  %s1020_s24 = smov [#allocation5]  }
 0x46d   : > { %s945_s25 = sshll.u32 %s1020_s24, 4  ;;  %s946_s25 = int_to_ptr.vmem [resolvable:$false] %s945_s25 }
 0x46e   : > { %p943_p10 = pnand %p942_p8, %p1277_p11  ;;  %s947_s26 = scalar_lea.vmem %s946_s25, 512 }
 0x46f   : > { %p948_p2 = scmp.lt.s32.totalorder %s1190_s4, %s946_s25  ;;  %p949_p4 = scmp.lt.s32.totalorder %s947_s26, %s941_s23 }
 0x470   : > { %p944_p0 = pneg %p943_p10 }
 0x471   : > { %p950_p5 = por %p949_p4, %p948_p2 }
 0x473   : > { %p951_p7 = pnand %p950_p5, %p944_p0 }
 0x475   : > { %954 = shalt.err (!%p951_p7)
}
 0x476   : > { %s955_s30 = scalar_lea.hbm %s1188_s17, 256  ;;  %s959_s19 = scalar_lea.hbm %s1269_s1, 512 }
 0x477   : > { %p956_p9 = scmp.ne.s32.totalorder %s1188_s17, %s955_s30  ;;  %p960_p6 = scmp.lt.u32.totalorder %s1188_s17, %s1269_s1 }
 0x478   : > { %p961_p12 = scmp.lt.u32.totalorder %s959_s19, %s955_s30  ;;  %p963_p8 = scmp.lt.u32.totalorder %s955_s30, %s1188_s17 }
 0x479   : > { %p957_p1 = pnand %p956_p9, %p1277_p11 }
 0x47a   : > { %p962_p13 = por %p961_p12, %p960_p6 }
 0x47b   : > { %p958_p3 = pneg %p957_p1 }
 0x47c   : > { %p964_p10 = por %p963_p8, %p962_p13 }
 0x47e   : > { %p965_p0 = pnand %p964_p10, %p958_p3 }
 0x480   : > { %968 = shalt.err (!%p965_p0)
}
 0x481   : > { %823 = dma.vmem_to_hbm [thread:$0]  (%p1277_p11), %s1190_s4, 256, %s1188_s17, %s591_s16, %s1018_s7, %s1018_s7, %s1019_s14  }
 0x482 PF: > { %s640_s6 = sand.u32 1, %s999_s9   ;;  %p1278_p2 = scmp.ne.s32.totalorder %s1275_s22, 0 }
 0x483   : > { %p1279_p4 = scmp.ge.s32.totalorder %s1011_s12, 2  ;;  %s641_s20 = scalar_lea.sflag [#allocation4], %s640_s6 }
 0x485   : > { %p832_p5 = pnand %p1279_p4, %p1278_p2 }
 0x487   : > { %990 = dma.done.wait (!%p832_p5), %s641_s20, 256  }
 0x488   : > { %992 = vsyncadd (!%p832_p5), %s641_s20, 4294967040  ;;  %s650_s21 = scalar_lea.sflag [#allocation7], %s640_s6 }
 0x489   : > { %994 = dma.done.wait (!%p832_p5), %s650_s21, 256  }
 0x48a   : > { %996 = vsyncadd (!%p832_p5), %s650_s21, 4294967040  ;;  %p19_p11 = scmp.ge.s32.totalorder %s1061_s15, 4   ;;  %s1280_s9 = smov %s1003_s10 }
 0x48b   : > { %s1281_s10 = smov %s1007_s11  ;;  %s1282_s11 = smov %s1073_s18 }
 0x48c   : > { %s1283_s12 = smov %s1061_s15  ;;  %21 = sbr.rel (!%p19_p11) target bundleno = 7 (0x7), region = 86 }
 0x493   :  { %655 = vsyncpa [#allocation3], 1 }
 0x494   :  { %657 = vsyncpa [#allocation3 + $0x1], 1 }
 0x495   :  { %658 = vsyncpa [#allocation4], 1 }
 0x496   :  { %660 = vsyncpa [#allocation4 + $0x1], 1 }
 0x497   :  { %661 = vsyncpa [#allocation7], 1 }
 0x498   :  { %663 = vsyncpa [#allocation7 + $0x1], 1 }

</bundles_post_ra>
